<compile_context>
chip_gen: v7x
topology: tpu7x:2x2x1
jax: 0.10.0
libtpu: 0.0.40
codegen_flags: <defaults>
</compile_context>

<pallas_src>
import functools

import jax
import jax.numpy as jnp
from jax.experimental import pallas as pl
from jax.experimental.pallas import tpu as pltpu

_BN_EPS = 1e-5


def _weighted_add_kernel(x_ref, w_ref, b_ref, gamma_ref, beta_ref, o_ref,
                         sum_ref, sumsq_ref, *, class_num, feat_dim, batch):
    """Two-phase kernel over grid (phase, batch_tile).

    phase 0: logits = x_tile @ w + b (bf16 MXU, f32 acc); accumulate global
             sum / sumsq of the logits into persistent VMEM scratch.
    phase 1: recompute the (tiny) logits — cheaper than stashing them for an
             arbitrary batch since x must be re-read for the weighted sum anyway —
             BatchNorm with global stats, softmax, weighted feature sum.
    """
    p = pl.program_id(0)
    t = pl.program_id(1)

    @pl.when((p == 0) & (t == 0))
    def _init():
        sum_ref[...] = jnp.zeros_like(sum_ref)
        sumsq_ref[...] = jnp.zeros_like(sumsq_ref)

    x = x_ref[...]                                           # (tb, C*F) f32
    # Linear logits on the MXU with bf16 operands, f32 accumulation.  The logit dim
    # stays at its logical width (class_num); Mosaic pads it to 128 lanes in VMEM
    # for free, so no mask is needed anywhere.
    z = jnp.dot(x.astype(jnp.bfloat16), w_ref[...],
                preferred_element_type=jnp.float32) + b_ref[...]   # (tb, C) f32

    @pl.when(p == 0)
    def _stats():
        sum_ref[...] += jnp.sum(z, axis=0, keepdims=True)
        sumsq_ref[...] += jnp.sum(z * z, axis=0, keepdims=True)
        # TODO(synk): E[z^2]-E[z]^2 can cancel if logits get a large mean; switch to a
        # centered / Welford-style accumulation if that ever matters.

    @pl.when(p == 1)
    def _apply():
        inv_n = 1.0 / batch                                  # constant multiply, no divide
        mean = sum_ref[...] * inv_n
        var = sumsq_ref[...] * inv_n - mean * mean
        y = (z - mean) * jax.lax.rsqrt(var + _BN_EPS)
        y = y * gamma_ref[...] + beta_ref[...]
        # TODO(synk): eval-mode BN (running_mean / running_var inputs) not implemented.

        # Softmax over the class dim (EUP exp + approx reciprocal keeps VALU free).
        m = jnp.max(y, axis=-1, keepdims=True)
        e = jnp.exp(y - m)
        attn = e * pl.reciprocal(jnp.sum(e, axis=-1, keepdims=True), approx=True)

        # Weighted sum of the class_num feature parts; with feat_dim % 128 == 0 every
        # slice and the output store is lane-aligned (fast path; other feat_dim still
        # correct, just pays lane shuffles / masked stores).
        acc = attn[:, 0:1] * x[:, 0:feat_dim]
        for c in range(1, class_num):                        # static, tiny trip count
            acc = acc + attn[:, c:c + 1] * x[:, c * feat_dim:(c + 1) * feat_dim]
        o_ref[...] = acc


def _pick_batch_tile(batch, target=1024):
    """Largest batch tile <= target that divides batch and is sublane-aligned."""
    if batch <= target:
        return batch
    start = target - (target % 8)
    for tb in range(start, 7, -8):
        if batch % tb == 0:
            return tb
    # TODO(synk): ragged batches (no sublane-aligned divisor) fall back to a single
    # full-batch tile; add last-tile row masking for very large ragged batches.
    return batch


@functools.partial(jax.jit, static_argnames=("class_num", "feat_dim", "batch_tile"))
def weighted_add_forward(x, w_t, b, gamma, beta, *, class_num, feat_dim,
                         batch_tile=None):
    batch, d_total = x.shape
    assert d_total == class_num * feat_dim

    tb = batch_tile if batch_tile is not None else _pick_batch_tile(batch)
    assert batch % tb == 0, "batch tile must divide batch"
    num_tiles = batch // tb

    # Params arrive pre-packed from init_params; these casts/reshapes are no-ops then.
    w_bf = w_t.astype(jnp.bfloat16)                          # (d_total, class_num)
    b2 = b.reshape(1, class_num).astype(jnp.float32)
    g2 = gamma.reshape(1, class_num).astype(jnp.float32)
    be2 = beta.reshape(1, class_num).astype(jnp.float32)

    kernel = functools.partial(_weighted_add_kernel, class_num=class_num,
                               feat_dim=feat_dim, batch=batch)

    # VMEM working set: double-buffered x tile + double-buffered out tile + params
    # (+ headroom).  Capped at 48 MiB so the same kernel fits v7x's 64 MiB VMEM.
    tile_bytes = tb * d_total * 4 + tb * feat_dim * 4
    vmem_limit = int(min(max(2 * tile_bytes + (2 << 20), 4 << 20), 48 << 20))

    flops = (2 * 2 * batch * d_total * class_num        # logits, both phases
             + 2 * batch * d_total                      # weighted sum
             + 12 * batch * class_num)                  # BN + softmax elementwise
    transcendentals = batch * class_num + batch + class_num
    bytes_accessed = (4 * (2 * batch * d_total          # x read in both phases
                           + batch * feat_dim)          # output
                      + 2 * d_total * class_num + 12 * class_num)

    grid = (2, num_tiles)                               # (phase, batch tile)
    return pl.pallas_call(
        kernel,
        out_shape=jax.ShapeDtypeStruct((batch, feat_dim), jnp.float32),
        grid=grid,
        in_specs=[
            pl.BlockSpec((tb, d_total), lambda p, t: (t, 0)),          # x: batch-tiled
            pl.BlockSpec((d_total, class_num), lambda p, t: (0, 0)),   # w: VMEM-resident
            pl.BlockSpec((1, class_num), lambda p, t: (0, 0)),         # bias
            pl.BlockSpec((1, class_num), lambda p, t: (0, 0)),         # gamma
            pl.BlockSpec((1, class_num), lambda p, t: (0, 0)),         # beta
        ],
        # Phase 0 keeps the output block index at 0 and never writes it, so no stale
        # data is flushed; phase 1 visits blocks 0..T-1 monotonically and fully writes.
        out_specs=pl.BlockSpec((tb, feat_dim), lambda p, t: (p * t, 0)),
        scratch_shapes=[pltpu.VMEM((1, class_num), jnp.float32),   # sum of logits
                        pltpu.VMEM((1, class_num), jnp.float32)],  # sum of logits^2
        compiler_params=pltpu.CompilerParams(
            # Both axes "arbitrary": phase 1 depends on phase 0's scratch stats and the
            # stats accumulate across ALL batch tiles, so the batch axis cannot be
            # megacore-sharded in this single-call scheme.
            # TODO(synk): v7x megacore variant — split into a stats call + an apply
            # call (or per-core partial stats with a combine) so the batch axis can be
            # marked "parallel".
            dimension_semantics=("arbitrary", "arbitrary"),
            vmem_limit_bytes=vmem_limit),
        cost_estimate=pl.CostEstimate(flops=int(flops),
                                      transcendentals=int(transcendentals),
                                      bytes_accessed=int(bytes_accessed)),
    )(x, w_bf, b2, g2, be2)


def init_params(key, feat_dim, class_num):
    """PyTorch-style init, pre-packed ONCE for the kernel (not per call):
       * Linear weight kaiming-uniform (bound = 1/sqrt(fan_in)), stored transposed as
         (D_in, class_num) in bf16 (MXU operand dtype).
       * bias / BN gamma / BN beta as (1, class_num) f32 rows.
    """
    d_total = feat_dim * class_num
    kw, kb = jax.random.split(key)
    bound = 1.0 / (d_total ** 0.5)
    w_t = jax.random.uniform(kw, (d_total, class_num), jnp.float32, -bound, bound)
    b = jax.random.uniform(kb, (1, class_num), jnp.float32, -bound, bound)
    gamma = jnp.ones((1, class_num), jnp.float32)
    beta = jnp.zeros((1, class_num), jnp.float32)
    return w_t.astype(jnp.bfloat16), b, gamma, beta


def _reference_forward(x, w_t, b, gamma, beta, class_num, feat_dim):
    """Pure-JAX reference of the module semantics (f32 math on the same params)."""
    y = x @ w_t.astype(jnp.float32) + b.reshape(1, -1)
    mean = jnp.mean(y, axis=0, keepdims=True)
    var = jnp.mean((y - mean) ** 2, axis=0, keepdims=True)
    y = (y - mean) / jnp.sqrt(var + _BN_EPS) * gamma.reshape(1, -1) + beta.reshape(1, -1)
    attn = jax.nn.softmax(y, axis=-1)                   # (B, class_num)
    xv = x.reshape(-1, class_num, feat_dim)
    return jnp.sum(xv * attn[:, :, None], axis=1)       # (B, feat_dim)


if __name__ == "__main__":
    feat_dim = 128     # lane-dense feature dim (output tiles are full 128-lane vregs)
    class_num = 3
    batch = 64         # small, but exercises the (2, 4) two-phase batch-tiled grid

    key = jax.random.PRNGKey(0)
    key, kx = jax.random.split(key)
    x = jax.random.normal(kx, (batch, class_num * feat_dim), jnp.float32)
    w_t, b, gamma, beta = init_params(key, feat_dim, class_num)

    out = weighted_add_forward(x, w_t, b, gamma, beta,
                               class_num=class_num, feat_dim=feat_dim,
                               batch_tile=16)
    out = jax.block_until_ready(out)

    ref = _reference_forward(x, w_t, b, gamma, beta, class_num, feat_dim)
    assert out.shape == (batch, feat_dim)
    # Tolerance covers the bf16 cast of x for the MXU matmul and the approx reciprocal.
    assert jnp.allclose(out, ref, rtol=1e-2, atol=1e-2), "mismatch vs reference"

    print("KERNEL_OK")
</pallas_src>

<mosaic_0001>
module attributes {stable_mosaic.version = 11 : i64} {
  func.func @_weighted_add_kernel(%arg0: i32, %arg1: i32, %arg2: memref<16x384xf32, #tpu.memory_space<vmem>>, %arg3: memref<384x3xbf16, #tpu.memory_space<vmem>>, %arg4: memref<1x3xf32, #tpu.memory_space<vmem>>, %arg5: memref<1x3xf32, #tpu.memory_space<vmem>>, %arg6: memref<1x3xf32, #tpu.memory_space<vmem>>, %arg7: memref<16x128xf32, #tpu.memory_space<vmem>>, %arg8: memref<1x3xf32, #tpu.memory_space<vmem>>, %arg9: memref<1x3xf32, #tpu.memory_space<vmem>>) attributes {dimension_semantics = [#tpu.dimension_semantics<arbitrary>, #tpu.dimension_semantics<arbitrary>], iteration_bounds = array<i64: 2, 4>, scalar_prefetch = 0 : i64, scratch_operands = 2 : i64, tpu.core_type = #tpu.core_type<tc>, window_params = [{transform_indices = @transform_0, window_bounds = array<i64: 16, 384>}, {pipeline_mode = #tpu.pipeline_mode<synchronous>, transform_indices = @transform_1, window_bounds = array<i64: 384, 3>}, {pipeline_mode = #tpu.pipeline_mode<synchronous>, transform_indices = @transform_2, window_bounds = array<i64: 1, 3>}, {pipeline_mode = #tpu.pipeline_mode<synchronous>, transform_indices = @transform_3, window_bounds = array<i64: 1, 3>}, {pipeline_mode = #tpu.pipeline_mode<synchronous>, transform_indices = @transform_4, window_bounds = array<i64: 1, 3>}, {transform_indices = @transform_5, window_bounds = array<i64: 16, 128>}]} {
    %c0_i32 = arith.constant 0 : i32
    %0 = arith.cmpi eq, %arg0, %c0_i32 : i32
    %c0_i32_0 = arith.constant 0 : i32
    %1 = arith.cmpi eq, %arg1, %c0_i32_0 : i32
    %2 = arith.andi %0, %1 : i1
    %3 = arith.extui %2 : i1 to i32
    %c0_i32_1 = arith.constant 0 : i32
    %4 = arith.cmpi ne, %3, %c0_i32_1 : i32
    scf.if %4 {
      %cst_10 = arith.constant 0.000000e+00 : f32
      %18 = vector.broadcast %cst_10 : f32 to vector<1x3xf32>
      %c0_11 = arith.constant 0 : index
      %c0_12 = arith.constant 0 : index
      %19 = vector.load %arg8[%c0_11, %c0_12] : memref<1x3xf32, #tpu.memory_space<vmem>>, vector<1x3xf32>
      tpu.vector_store %arg8[%c0_11, %c0_12], %18 {strides = array<i32>} : memref<1x3xf32, #tpu.memory_space<vmem>>, vector<1x3xf32>,
      %cst_13 = arith.constant 0.000000e+00 : f32
      %20 = vector.broadcast %cst_13 : f32 to vector<1x3xf32>
      %c0_14 = arith.constant 0 : index
      %c0_15 = arith.constant 0 : index
      %21 = vector.load %arg9[%c0_14, %c0_15] : memref<1x3xf32, #tpu.memory_space<vmem>>, vector<1x3xf32>
      tpu.vector_store %arg9[%c0_14, %c0_15], %20 {strides = array<i32>} : memref<1x3xf32, #tpu.memory_space<vmem>>, vector<1x3xf32>,
    } else {
    }
    %c0 = arith.constant 0 : index
    %c0_2 = arith.constant 0 : index
    %5 = vector.load %arg2[%c0, %c0_2] : memref<16x384xf32, #tpu.memory_space<vmem>>, vector<16x384xf32>
    %6 = arith.truncf %5 : vector<16x384xf32> to vector<16x384xbf16>
    %c0_3 = arith.constant 0 : index
    %c0_4 = arith.constant 0 : index
    %7 = vector.load %arg3[%c0_3, %c0_4] : memref<384x3xbf16, #tpu.memory_space<vmem>>, vector<384x3xbf16>
    %cst = arith.constant dense<0.000000e+00> : vector<16x3xf32>
    %8 = tpu.matmul %6, %7, %cst {dimension_numbers = #tpu.dot_dimension_numbers<[1], [0], [0], [1], [0, 0, 1, 1], [], []>} : vector<16x384xbf16>, vector<384x3xbf16>, vector<16x3xf32> -> vector<16x3xf32>
    %c0_5 = arith.constant 0 : index
    %c0_6 = arith.constant 0 : index
    %9 = vector.load %arg4[%c0_5, %c0_6] : memref<1x3xf32, #tpu.memory_space<vmem>>, vector<1x3xf32>
    %10 = vector.broadcast %9 : vector<1x3xf32> to vector<16x3xf32>
    %11 = arith.addf %8, %10 : vector<16x3xf32>
    %c0_i32_7 = arith.constant 0 : i32
    %12 = arith.cmpi eq, %arg0, %c0_i32_7 : i32
    %13 = arith.extui %12 : i1 to i32
    %c0_i32_8 = arith.constant 0 : i32
    %14 = arith.cmpi ne, %13, %c0_i32_8 : i32
    scf.if %14 {
      %c0_10 = arith.constant 0 : index
      %c0_11 = arith.constant 0 : index
      %18 = vector.load %arg8[%c0_10, %c0_11] : memref<1x3xf32, #tpu.memory_space<vmem>>, vector<1x3xf32>
      %cst_12 = arith.constant dense<0.000000e+00> : vector<3xf32>
      %19 = vector.multi_reduction <add>, %11, %cst_12 [0] : vector<16x3xf32> to vector<3xf32>
      %20 = vector.shape_cast %19 : vector<3xf32> to vector<1x3xf32>
      %21 = arith.addf %18, %20 : vector<1x3xf32>
      %c0_13 = arith.constant 0 : index
      %c0_14 = arith.constant 0 : index
      %22 = vector.load %arg8[%c0_13, %c0_14] : memref<1x3xf32, #tpu.memory_space<vmem>>, vector<1x3xf32>
      tpu.vector_store %arg8[%c0_13, %c0_14], %21 {strides = array<i32>} : memref<1x3xf32, #tpu.memory_space<vmem>>, vector<1x3xf32>,
      %c0_15 = arith.constant 0 : index
      %c0_16 = arith.constant 0 : index
      %23 = vector.load %arg9[%c0_15, %c0_16] : memref<1x3xf32, #tpu.memory_space<vmem>>, vector<1x3xf32>
      %24 = arith.mulf %11, %11 : vector<16x3xf32>
      %cst_17 = arith.constant dense<0.000000e+00> : vector<3xf32>
      %25 = vector.multi_reduction <add>, %24, %cst_17 [0] : vector<16x3xf32> to vector<3xf32>
      %26 = vector.shape_cast %25 : vector<3xf32> to vector<1x3xf32>
      %27 = arith.addf %23, %26 : vector<1x3xf32>
      %c0_18 = arith.constant 0 : index
      %c0_19 = arith.constant 0 : index
      %28 = vector.load %arg9[%c0_18, %c0_19] : memref<1x3xf32, #tpu.memory_space<vmem>>, vector<1x3xf32>
      tpu.vector_store %arg9[%c0_18, %c0_19], %27 {strides = array<i32>} : memref<1x3xf32, #tpu.memory_space<vmem>>, vector<1x3xf32>,
    } else {
    }
    %c1_i32 = arith.constant 1 : i32
    %15 = arith.cmpi eq, %arg0, %c1_i32 : i32
    %16 = arith.extui %15 : i1 to i32
    %c0_i32_9 = arith.constant 0 : i32
    %17 = arith.cmpi ne, %16, %c0_i32_9 : i32
    scf.if %17 {
      %c0_10 = arith.constant 0 : index
      %c0_11 = arith.constant 0 : index
      %18 = vector.load %arg8[%c0_10, %c0_11] : memref<1x3xf32, #tpu.memory_space<vmem>>, vector<1x3xf32>
      %cst_12 = arith.constant 1.562500e-02 : f32
      %19 = vector.broadcast %cst_12 : f32 to vector<1x3xf32>
      %20 = arith.mulf %18, %19 : vector<1x3xf32>
      %c0_13 = arith.constant 0 : index
      %c0_14 = arith.constant 0 : index
      %21 = vector.load %arg9[%c0_13, %c0_14] : memref<1x3xf32, #tpu.memory_space<vmem>>, vector<1x3xf32>
      %cst_15 = arith.constant 1.562500e-02 : f32
      %22 = vector.broadcast %cst_15 : f32 to vector<1x3xf32>
      %23 = arith.mulf %21, %22 : vector<1x3xf32>
      %24 = arith.mulf %20, %20 : vector<1x3xf32>
      %25 = arith.subf %23, %24 : vector<1x3xf32>
      %26 = vector.broadcast %20 : vector<1x3xf32> to vector<16x3xf32>
      %27 = arith.subf %11, %26 : vector<16x3xf32>
      %cst_16 = arith.constant 9.99999974E-6 : f32
      %28 = vector.broadcast %cst_16 : f32 to vector<1x3xf32>
      %29 = arith.addf %25, %28 : vector<1x3xf32>
      %30 = math.rsqrt %29 : vector<1x3xf32>
      %31 = vector.broadcast %30 : vector<1x3xf32> to vector<16x3xf32>
      %32 = arith.mulf %27, %31 : vector<16x3xf32>
      %c0_17 = arith.constant 0 : index
      %c0_18 = arith.constant 0 : index
      %33 = vector.load %arg5[%c0_17, %c0_18] : memref<1x3xf32, #tpu.memory_space<vmem>>, vector<1x3xf32>
      %34 = vector.broadcast %33 : vector<1x3xf32> to vector<16x3xf32>
      %35 = arith.mulf %32, %34 : vector<16x3xf32>
      %c0_19 = arith.constant 0 : index
      %c0_20 = arith.constant 0 : index
      %36 = vector.load %arg6[%c0_19, %c0_20] : memref<1x3xf32, #tpu.memory_space<vmem>>, vector<1x3xf32>
      %37 = vector.broadcast %36 : vector<1x3xf32> to vector<16x3xf32>
      %38 = arith.addf %35, %37 : vector<16x3xf32>
      %cst_21 = arith.constant dense<0xFF800000> : vector<16xf32>
      %39 = vector.multi_reduction <maximumf>, %38, %cst_21 [1] : vector<16x3xf32> to vector<16xf32>
      %40 = vector.shape_cast %39 : vector<16xf32> to vector<16x1xf32>
      %41 = vector.broadcast %40 : vector<16x1xf32> to vector<16x3xf32>
      %42 = arith.subf %38, %41 : vector<16x3xf32>
      %43 = math.exp %42 : vector<16x3xf32>
      %cst_22 = arith.constant dense<0.000000e+00> : vector<16xf32>
      %44 = vector.multi_reduction <add>, %43, %cst_22 [1] : vector<16x3xf32> to vector<16xf32>
      %45 = vector.shape_cast %44 : vector<16xf32> to vector<16x1xf32>
      %46 = tpu.reciprocal %45 {approx = true} : vector<16x1xf32> -> vector<16x1xf32>
      %47 = vector.broadcast %46 : vector<16x1xf32> to vector<16x3xf32>
      %48 = arith.mulf %43, %47 : vector<16x3xf32>
      %49 = vector.extract_strided_slice %48 {offsets = [0, 0], sizes = [16, 1], strides = [1, 1]} : vector<16x3xf32> to vector<16x1xf32>
      %50 = vector.extract_strided_slice %5 {offsets = [0, 0], sizes = [16, 128], strides = [1, 1]} : vector<16x384xf32> to vector<16x128xf32>
      %51 = vector.broadcast %49 : vector<16x1xf32> to vector<16x128xf32>
      %52 = arith.mulf %51, %50 : vector<16x128xf32>
      %53 = vector.extract_strided_slice %48 {offsets = [0, 1], sizes = [16, 1], strides = [1, 1]} : vector<16x3xf32> to vector<16x1xf32>
      %54 = vector.extract_strided_slice %5 {offsets = [0, 128], sizes = [16, 128], strides = [1, 1]} : vector<16x384xf32> to vector<16x128xf32>
      %55 = vector.broadcast %53 : vector<16x1xf32> to vector<16x128xf32>
      %56 = arith.mulf %55, %54 : vector<16x128xf32>
      %57 = arith.addf %52, %56 : vector<16x128xf32>
      %58 = vector.extract_strided_slice %48 {offsets = [0, 2], sizes = [16, 1], strides = [1, 1]} : vector<16x3xf32> to vector<16x1xf32>
      %59 = vector.extract_strided_slice %5 {offsets = [0, 256], sizes = [16, 128], strides = [1, 1]} : vector<16x384xf32> to vector<16x128xf32>
      %60 = vector.broadcast %58 : vector<16x1xf32> to vector<16x128xf32>
      %61 = arith.mulf %60, %59 : vector<16x128xf32>
      %62 = arith.addf %57, %61 : vector<16x128xf32>
      %c0_23 = arith.constant 0 : index
      %c0_24 = arith.constant 0 : index
      %63 = vector.load %arg7[%c0_23, %c0_24] : memref<16x128xf32, #tpu.memory_space<vmem>>, vector<16x128xf32>
      tpu.vector_store %arg7[%c0_23, %c0_24], %62 {strides = array<i32>} : memref<16x128xf32, #tpu.memory_space<vmem>>, vector<16x128xf32>,
    } else {
    }
    return
  }
  func.func @transform_0(%arg0: i32, %arg1: i32) -> (i32, i32) {
    %c0_i32 = arith.constant 0 : i32
    %c0_i32_0 = arith.constant 0 : i32
    return %arg1, %c0_i32 : i32, i32
  }
  func.func @transform_1(%arg0: i32, %arg1: i32) -> (i32, i32) {
    %c0_i32 = arith.constant 0 : i32
    %c0_i32_0 = arith.constant 0 : i32
    %c0_i32_1 = arith.constant 0 : i32
    return %c0_i32, %c0_i32_0 : i32, i32
  }
  func.func @transform_2(%arg0: i32, %arg1: i32) -> (i32, i32) {
    %c0_i32 = arith.constant 0 : i32
    %c0_i32_0 = arith.constant 0 : i32
    %c0_i32_1 = arith.constant 0 : i32
    return %c0_i32, %c0_i32_0 : i32, i32
  }
  func.func @transform_3(%arg0: i32, %arg1: i32) -> (i32, i32) {
    %c0_i32 = arith.constant 0 : i32
    %c0_i32_0 = arith.constant 0 : i32
    %c0_i32_1 = arith.constant 0 : i32
    return %c0_i32, %c0_i32_0 : i32, i32
  }
  func.func @transform_4(%arg0: i32, %arg1: i32) -> (i32, i32) {
    %c0_i32 = arith.constant 0 : i32
    %c0_i32_0 = arith.constant 0 : i32
    %c0_i32_1 = arith.constant 0 : i32
    return %c0_i32, %c0_i32_0 : i32, i32
  }
  func.func @transform_5(%arg0: i32, %arg1: i32) -> (i32, i32) {
    %0 = arith.muli %arg0, %arg1 : i32
    %c0_i32 = arith.constant 0 : i32
    %c0_i32_0 = arith.constant 0 : i32
    return %0, %c0_i32 : i32, i32
  }
}

</mosaic_0001>

<bundles_post_ra>
// kernel: weighted_add_forward.1
= control target key start
LH: loop header
LB: loop body
LE: loop exit
PB: predicated region body
PF: predicated region fallthrough
CT: control target
= control target key end

     0   :  { %10 = vsyncpa [#allocation5], 0  ;;  %s1385_s0 = inlined_call_operand.vmem [shape: f32[64,384], index: 0, kind: input, shape index: {}]   ;;  %s1386_s1 = inlined_call_operand.vmem [shape: bf16[384,3], index: 1, kind: input, shape index: {}]   ;;  %s1387_s2 = inlined_call_operand.vmem [shape: f32[1,3], index: 2, kind: input, shape index: {}]   ;;  %s1388_s3 = inlined_call_operand.vmem [shape: f32[1,3], index: 3, kind: input, shape index: {}]   ;;  %s1389_s4 = inlined_call_operand.vmem [shape: f32[1,3], index: 4, kind: input, shape index: {}]   ;;  %s1390_s5 = inlined_call_operand.hbm [shape: f32[64,128], index: 5, kind: output, shape index: {}]  }
   0x1   :  { %12 = vsyncpa [#allocation5 + $0x1], 0  ;;  %s1118_s18 = smov 0   ;;  %s1120_s19 = smov 0  }
   0x2   :  { %s1122_s20 = smov 0   ;;  %s1124_s21 = smov 0  }
   0x3   :  { %s1126_s22 = smov 0   ;;  %s1128_s23 = smov 0  }
   0x4   :  { %s1130_s24 = smov 0   ;;  %s1132_s25 = smov 0  }
   0x5 LB: > { %s770_s26 = sadd.s32 4294967295, %s1077_s25   ;;  %s771_s27 = sadd.s32 4294967294, %s1077_s25   ;;  %s1077_s25 = sphi %s1132_s25, %s18_s25   ;;  %s1073_s24 = sphi %s1130_s24, %s1401_s24   ;;  %s1069_s23 = sphi %s1128_s23, %s1400_s23   ;;  %s1065_s22 = sphi %s1126_s22, %s1399_s22   ;;  %s1061_s21 = sphi %s1124_s21, %s1398_s21   ;;  %s1057_s20 = sphi %s1122_s20, %s1397_s20   ;;  %s1053_s19 = sphi %s1120_s19, %s1396_s19   ;;  %s1049_s18 = sphi %s1118_s18, %s1395_s18  }
   0x6   : > { %s27_s28 = sadd.s32 1, %s1069_s23  ;;  %s30_s29 = sadd.s32 1, %s1073_s24 }
   0x7   : > { %p28_p0 = scmp.ge.s32.totalorder %s27_s28, 4  ;;  %s144_s30 = smul.u32 %s1069_s23, %s1073_s24 }
   0x8   : > { %p159_p1 = scmp.ne.s32.totalorder %s1057_s20, %s1053_s19  ;;  %p160_p2 = scmp.eq.s32.totalorder %s770_s26, 7 }
   0x9   : > { %s1403_s28 = smov (%p28_p0, %s27_s28), 0  ;;  %s1405_s29 = smov (!%p28_p0, %s30_s29), %s1073_s24 }
   0xa   : > { %p165_p3 = scmp.ne.s32.totalorder %s1053_s19, %s1049_s18  ;;  %p32_p4 = scmp.ge.s32.totalorder %s1405_s29, 2 }
   0xb   : > { %p166_p5 = scmp.eq.s32.totalorder %s771_s27, 7  ;;  %p1171_p6 = por %p160_p2, %p159_p1 }
   0xc   : > { %p774_p7 = scmp.ge.s32.totalorder %s1077_s25, 1  ;;  %s1407_s29 = smov (%p32_p4, %s1405_s29), 0 }
   0xd   : > { %p1178_p8 = por %p166_p5, %p165_p3  ;;  %p206_p9 = scmp.lt.s32.totalorder %s1077_s25, 9 }
   0xe   : > { %s145_s8 = smul.u32 %s1407_s29, %s1403_s28  ;;  %s149_s10 = sadd.s32 1, %s1057_s20 }
   0xf   : > { %p207_p10 = pnand %p774_p7, %p206_p9 }
  0x10   : > { %s146_s9 = ssub.s32 %s144_s30, %s145_s8  ;;  %s1391_s12 = sand.u32 (!%p207_p10), 1, %s1053_s19  }
  0x11   : > { %p147_p11 = scmp.eq.s32.totalorder %s146_s9, 0  ;;  %210 = sbr.rel (%p207_p10) target bundleno = 835 (0x343), region = 40 }
  0x12   : > { %s776_s13 = sshll.u32 (!%p207_p10), %s1061_s21, 1  ;;  %s775_s14 = sshll.u32 (!%p207_p10), %s1391_s12, 4 }
  0x13   : > { %s1187_s11 = scalar_select %p147_p11, %s1057_s20, %s149_s10  }
  0x14   : > { %p236_p12 = scmp.lt.s32.totalorder (!%p207_p10), %s776_s13, 7  ;;  %p245_p13 = scmp.eq.s32.totalorder (!%p207_p10), %s1065_s22, 0 }
  0x15   : > { %p246_p0 = scmp.eq.s32.totalorder (!%p207_p10), %s1061_s21, 0  ;;  %s1200_s27 = scalar_lea.vmem (!%p207_p10), [#allocation4], %s775_s14 }
  0x17   : > { %p247_p1 = pnand (!%p207_p10), %p246_p0, %p245_p13 }
  0x18   : > { %s1409_s13 = smov (!%p236_p12, %s776_s13), 7  ;;  %vm251_vm0 = vcmask (!%p247_p1), 16384   ;;  %v1079_v0 = vmov (!%p247_p1), 0.0  }
  0x19   : > { %s864_s15 = smul.u32 24, %s1409_s13  ;;  %252 = vst.msk [vmem:[#allocation2] sm:$0x1] (!%p247_p1), %vm251_vm0, %v1079_v0  ;;  %253 = vst.msk [vmem:[#allocation3] sm:$0x1] (!%p247_p1), %vm251_vm0, %v1079_v0 }
  0x1a   : > { %250 = sbr.rel (%p247_p1) target bundleno = 33 (0x21), region = 44 }
  0x1b   : > { %s1198_s26 = scalar_lea.vmem %s1385_s0, %s864_s15 }
  0x21 PF: > { %v944_v1 = vld [vmem:[%s1386_s1 + $0x40] sm:$0xff]   ;;  %v1080_v3 = vmov 0.0   ;;  %vm1081_vm1 = vmmov 0   ;;  %v947_v5 = vld [vmem:[%s1386_s1 + $0x48] sm:$0xff]   ;;  %v950_v8 = vld [vmem:[%s1386_s1 + $0x50] sm:$0xff]   ;;  %p803_p2 = scmp.ne.s32.totalorder %s1065_s22, 0 }
  0x22   : > { %v945_v2 = vld [vmem:[%s1386_s1] sm:$0xff]   ;;  %844 = vmatprep.subr.bf16.mxu1 %v1080_v3  ;;  %813 = vmatprep.subr.bf16.mxu0 %v944_v1  ;;  %v948_v6 = vld [vmem:[%s1386_s1 + $0x8] sm:$0xff]   ;;  %v951_v9 = vld [vmem:[%s1386_s1 + $0x10] sm:$0xff]   ;;  %vm548_vm2 = vcmask (!%p803_p2), 23552   ;;  %vm559_vm3 = vcmask (!%p803_p2), 16384  }
  0x23   : > { %v946_v4 = vld [vmem:[%s1386_s1 + $0x80] sm:$0xff]   ;;  %860 = vmatprep.mubr.msk.bf16.mxu1 %vm1081_vm1, %v1080_v3  ;;  %814 = vmatpush3.bf16.msra.mxu0 %v945_v2  ;;  %v949_v7 = vld [vmem:[%s1386_s1 + $0x88] sm:$0xff]   ;;  %v952_v10 = vld [vmem:[%s1386_s1 + $0x90] sm:$0xff]  }
  0x24   : > { %845 = vmatpush3.bf16.msra.mxu1 %v946_v4  ;;  %815 = vmatprep.subr.bf16.mxu0 %v947_v5  ;;  %v953_v11 = vld [vmem:[%s1386_s1 + $0x58] sm:$0xff]   ;;  %v956_v14 = vld [vmem:[%s1386_s1 + $0x60] sm:$0xff]   ;;  %v959_v17 = vld [vmem:[%s1386_s1 + $0x68] sm:$0xff]  }
  0x25   : > { %846 = vmatprep.subr.bf16.mxu1 %v1080_v3  ;;  %v954_v12 = vld [vmem:[%s1386_s1 + $0x18] sm:$0xff]   ;;  %v957_v15 = vld [vmem:[%s1386_s1 + $0x20] sm:$0xff]   ;;  %v960_v18 = vld [vmem:[%s1386_s1 + $0x28] sm:$0xff]  }
  0x26   : > { %v955_v13 = vld [vmem:[%s1386_s1 + $0x98] sm:$0xff]   ;;  %v958_v16 = vld [vmem:[%s1386_s1 + $0xa0] sm:$0xff]   ;;  %v961_v19 = vld [vmem:[%s1386_s1 + $0xa8] sm:$0xff]  }
  0x27   : > { %816 = vmatpush3.bf16.msra.mxu0 %v948_v6  ;;  %v962_v20 = vld [vmem:[%s1386_s1 + $0x70] sm:$0xff]   ;;  %v1263_v22 = vld [vmem:[%s1198_s26 + $0x8] sm:$0xff]  ;;  %v1266_v23 = vld [vmem:[%s1198_s26 + $0x20] sm:$0xff] }
  0x28   : > { %847 = vmatpush3.bf16.msra.mxu1 %v949_v7  ;;  %817 = vmatprep.subr.bf16.mxu0 %v950_v8  ;;  %v963_v21 = vld [vmem:[%s1386_s1 + $0x30] sm:$0xff]   ;;  %v965_v25 = vld [vmem:[%s1386_s1 + $0x78] sm:$0xff]   ;;  %v261_v26 = vpack.c.bf16 %v1266_v23, %v1263_v22  ;;  %v1280_v28 = vld [vmem:[%s1198_s26] sm:$0xff] }
  0x29   : > { %848 = vmatprep.subr.bf16.mxu1 %v1080_v3  ;;  %v964_v24 = vld [vmem:[%s1386_s1 + $0xb0] sm:$0xff]   ;;  %v966_v27 = vld [vmem:[%s1386_s1 + $0x38] sm:$0xff]   ;;  %v1292_v32 = vld [vmem:[%s1198_s26 + $0x28] sm:$0xff] }
  0x2a   : > { %494 = vmatprep.mubr.bf16.mxu0 %v261_v26  ;;  %v1283_v29 = vld [vmem:[%s1198_s26 + $0x18] sm:$0xff]  ;;  %v1289_v31 = vld [vmem:[%s1198_s26 + $0x10] sm:$0xff]  ;;  %v778_v37 = vld [vmem:[%s1387_s2] ss:$0 sm:$0xff] }
  0x2b   : > { %818 = vmatpush3.bf16.msra.mxu0 %v951_v9  ;;  %v967_v30 = vld [vmem:[%s1386_s1 + $0xb8] sm:$0xff]   ;;  %v260_v33 = vpack.c.bf16 %v1283_v29, %v1280_v28  ;;  %v262_v34 = vpack.c.bf16 %v1292_v32, %v1289_v31  ;;  %v561_v6 = vld [vmem:[#allocation3] sm:$0x1] (!%p803_p2) }
  0x2c   : > { %849 = vmatpush3.bf16.msra.mxu1 %v952_v10  ;;  %819 = vmatprep.subr.bf16.mxu0 %v953_v11 }
  0x2d   : > { %850 = vmatprep.subr.bf16.mxu1 %v1080_v3 }
  0x2f   : > { %820 = vmatpush3.bf16.msra.mxu0 %v954_v12 }
  0x30   : > { %851 = vmatpush3.bf16.msra.mxu1 %v955_v13  ;;  %821 = vmatprep.subr.bf16.mxu0 %v956_v14 }
  0x31   : > { %852 = vmatprep.subr.bf16.mxu1 %v1080_v3 }
  0x33   : > { %822 = vmatpush3.bf16.msra.mxu0 %v957_v15 }
  0x34   : > { %853 = vmatpush3.bf16.msra.mxu1 %v958_v16  ;;  %823 = vmatprep.subr.bf16.mxu0 %v959_v17 }
  0x35   : > { %854 = vmatprep.subr.bf16.mxu1 %v1080_v3 }
  0x37   : > { %824 = vmatpush3.bf16.msra.mxu0 %v960_v18 }
  0x38   : > { %855 = vmatpush3.bf16.msra.mxu1 %v961_v19  ;;  %825 = vmatprep.subr.bf16.mxu0 %v962_v20 }
  0x39   : > { %856 = vmatprep.subr.bf16.mxu1 %v1080_v3 }
  0x3b   : > { %826 = vmatpush3.bf16.msra.mxu0 %v963_v21 }
  0x3c   : > { %857 = vmatpush3.bf16.msra.mxu1 %v964_v24  ;;  %827 = vmatprep.subr.bf16.mxu0 %v965_v25 }
  0x3d   : > { %858 = vmatprep.subr.bf16.mxu1 %v1080_v3  ;;  %v547_v3 = vld [vmem:[#allocation2] sm:$0x1] (!%p803_p2) }
  0x3f   : > { %828 = vmatpush3.bf16.msra.mxu0 %v966_v27 }
  0x40   : > { %859 = vmatpush3.bf16.msra.mxu1 %v967_v30 }
  0x42   : > { %495 = vmatmul.mubr.bf16.vlgmr.msra.gmra.mrb[0].mxu0 %v260_v33 }
  0x43   : > { %861 = vmatmul.mubr.bf16.vlgmr.msra.gmra.mrb[0].mxu1 %v262_v34 }
 0x115   : > { %v829_v35 = vpop.f32.mrb[0].mxu0 }
 0x116   : > { %v830_v36 = vpop.f32.mrb[1].mxu0  ;;  %v537_v38 = vpop.f32.mrb[0].mxu1 }
 0x117   : > { %v831_v39 = vadd.f32 %v830_v36, %v829_v35  ;;  %v832_v40 = vpop.f32.mrb[2].mxu0  ;;  %v862_v41 = vpop.f32.mrb[1].mxu1  ;;  %546 = sbr.rel (%p803_p2) target bundleno = 307 (0x133), region = 48 }
 0x118   : > { %v833_v42 = vpop.f32.mrb[3].mxu0  ;;  %v540_v43 = vpop.f32.mrb[2].mxu1 }
 0x119   : > { %v497_v44 = vadd.f32 %v831_v39, %v778_v37  ;;  %v834_v45 = vadd.f32 %v833_v42, %v832_v40  ;;  %v863_v46 = vpop.f32.mrb[3].mxu1 }
 0x11b   : > { %v538_v47 = vadd.f32 %v537_v38, %v497_v44  ;;  %v500_v48 = vadd.f32 %v834_v45, %v778_v37 }
 0x11d   : > { %v541_v49 = vadd.f32 %v540_v43, %v500_v48  ;;  %v562_v50 = vmul.f32 (!%p803_p2), %v538_v47, %v538_v47  ;;  %v549_v52 = vsel (!%p803_p2), %vm548_vm2, %v538_v47, 0.0 }
 0x11f   : > { %v563_v51 = vmul.f32 %v541_v49, %v541_v49  ;;  %v550_v53 = vsel %vm548_vm2, %v541_v49, 0.0  ;;  %v564_v55 = vsel %vm548_vm2, %v562_v50, 0.0 }
 0x120   : > { %v551_v54 = vadd.f32 %v550_v53, %v549_v52 }
 0x121   : > { %v565_v56 = vsel %vm548_vm2, %v563_v51, 0.0 }
 0x122   : > { %v566_v57 = vadd.f32 %v565_v56, %v564_v55  ;;  %v552_v58 = vrot.slane %v551_v54, 4 }
 0x124   : > { %v567_v59 = vrot.slane %v566_v57, 4  ;;  %v553_v60 = vadd.f32 %v552_v58, %v551_v54 }
 0x126   : > { %v568_v61 = vadd.f32 %v567_v59, %v566_v57  ;;  %v554_v62 = vrot.slane %v553_v60, 2 }
 0x128   : > { %v569_v63 = vrot.slane %v568_v61, 2  ;;  %v555_v0 = vadd.f32 %v554_v62, %v553_v60 }
 0x12a   : > { %v570_v1 = vadd.f32 %v569_v63, %v568_v61  ;;  %v556_v2 = vrot.slane %v555_v0, 1 }
 0x12c   : > { %v571_v4 = vrot.slane %v570_v1, 1  ;;  %v557_v5 = vadd.f32 %v556_v2, %v555_v0 }
 0x12e   : > { %v572_v7 = vadd.f32 %v571_v4, %v570_v1  ;;  %v558_v8 = vadd.f32 %v557_v5, %v547_v3 }
 0x130   : > { %v573_v9 = vadd.f32 %v572_v7, %v561_v6  ;;  %560 = vst.msk [vmem:[#allocation2] sm:$0x1] %vm559_vm3, %v558_v8 }
 0x132   : > { %574 = vst.msk [vmem:[#allocation3] sm:$0x1] %vm559_vm3, %v573_v9 }
 0x133 PF: > { %p804_p3 = scmp.ne.s32.totalorder %s1065_s22, 1 }
 0x134   : > { %v586_v14 = vlaneseq (!%p804_p3)  ;;  %v805_v27 = vld [vmem:[%s1388_s3] ss:$0 sm:$0xff] (!%p804_p3)  ;;  %vm621_vm4 = vcmask (!%p804_p3), 23552   ;;  %v1082_v51 = vmov (!%p804_p3), 0   ;;  %v1083_v58 = vmov (!%p804_p3), 2  }
 0x135   : > { %578 = sbr.rel (%p804_p3) target bundleno = 808 (0x328), region = 52  ;;  %v806_v34 = vld [vmem:[%s1389_s4] ss:$0 sm:$0xff] (!%p804_p3)  ;;  %968 = vset.pattern.permute.xlu0 (!%p804_p3), %v1082_v51  ;;  %969 = vset.pattern.permute.xlu1 (!%p804_p3), %v1082_v51  ;;  %v1084_v59 = vmov (!%p804_p3), 1  }
 0x136   : > { %v587_v17 = vshrl.u32 (!%p804_p3), %v586_v14, 7 }
 0x137   : > { %v579_v10 = vld [vmem:[#allocation2] sm:$0x1] (!%p804_p3) }
 0x138   : > { %v580_v12 = vmul.f32 (!%p804_p3), 0.015625, %v579_v10  ;;  %v588_v19 = vsub.s32 (!%p804_p3), 0, %v587_v17 }
 0x139   : > { %v581_v11 = vld [vmem:[#allocation3] sm:$0x1] (!%p804_p3) }
 0x13a   : > { %v582_v13 = vmul.f32 (!%p804_p3), 0.015625, %v581_v11  ;;  %v583_v15 = vmul.f32 (!%p804_p3), %v580_v12, %v580_v12  ;;  %v589_v20 = vrot.slane (!%p804_p3), %v580_v12, %v588_v19 }
 0x13c   : > { %v584_v16 = vsub.f32 %v582_v13, %v583_v15  ;;  %v591_v21 = vsub.f32 %v538_v47, %v589_v20  ;;  %v592_v24 = vsub.f32 %v541_v49, %v589_v20 }
 0x13e   : > { %v593_v18 = vadd.f32 1e-05, %v584_v16 }
 0x140   : > { %973 = vrsqrt.f32 %v593_v18 }
 0x14a   : > { %v974_v25 = vpop.eup %973 }
 0x14b   : > { %v599_v26 = vrot.slane %v974_v25, %v588_v19 }
 0x14d   : > { %v601_v30 = vmul.f32 %v599_v26, %v591_v21  ;;  %v602_v33 = vmul.f32 %v599_v26, %v592_v24 }
 0x14f   : > { %v610_v35 = vmul.f32 %v805_v27, %v601_v30  ;;  %v611_v36 = vmul.f32 %v805_v27, %v602_v33 }
 0x151   : > { %v619_v37 = vadd.f32 %v806_v34, %v610_v35  ;;  %v620_v38 = vadd.f32 %v806_v34, %v611_v36 }
 0x153   : > { %v622_v39 = vsel %vm621_vm4, %v619_v37, -inf  ;;  %v625_v40 = vsel %vm621_vm4, %v620_v38, -inf }
 0x154   : > { %623 = vmax.xlane.f32.xlu0 %v622_v39 }
 0x158   : > { %626 = vmax.xlane.f32.xlu0 %v625_v40 }
 0x1e1   : > { %v624_v41 = vpop.xlane.xlu0 %623 }
 0x1e2   : > { %v628_v42 = vsub.f32 %v619_v37, %v624_v41 }
 0x1e4   : > { %v630_v43 = vmul.f32 1.442695, %v628_v42 }
 0x1e5   : > { %v627_v44 = vpop.xlane.xlu0 %626 }
 0x1e6   : > { %975 = vpow2.f32 %v630_v43  ;;  %v629_v45 = vsub.f32 %v620_v38, %v627_v44 }
 0x1e8   : > { %v632_v46 = vmul.f32 1.442695, %v629_v45 }
 0x1ea   : > { %977 = vpow2.f32 %v632_v46 }
 0x1f0   : > { %v976_v47 = vpop.eup %975 }
 0x1f1   : > { %v634_v48 = vsel %vm621_vm4, %v976_v47, 0.0 }
 0x1f2   : > { %635 = vadd.xlane.f32.xlu1 %v634_v48 }
 0x1f4   : > { %v978_v49 = vpop.eup %977 }
 0x1f5   : > { %v637_v50 = vsel %vm621_vm4, %v978_v49, 0.0 }
 0x1f6   : > { %638 = vadd.xlane.f32.xlu1 %v637_v50 }
 0x27f   : > { %v636_v52 = vpop.xlane.xlu1 %635 }
 0x280   : > { %979 = vrcp.f32 %v636_v52 }
 0x283   : > { %v639_v53 = vpop.xlane.xlu1 %638 }
 0x284   : > { %981 = vrcp.f32 %v639_v53 }
 0x28a   : > { %v980_v54 = vpop.eup %979 }
 0x28b   : > { %v642_v55 = vmul.f32 %v980_v54, %v976_v47 }
 0x28d   : > { %646 = vperm.xlu0 %968, %v642_v55  }
 0x28e   : > { %v982_v56 = vpop.eup %981 }
 0x28f   : > { %v643_v57 = vmul.f32 %v982_v56, %v978_v49 }
 0x291   : > { %651 = vperm.xlu1 %969, %v643_v57   ;;  %972 = vset.pattern.permute.xlu0 %v1083_v58 }
 0x295   : > { %970 = vset.pattern.permute.xlu1 %v1084_v59 }
 0x296   : > { %657 = vperm.xlu1 %970, %v642_v55  }
 0x29a   : > { %661 = vperm.xlu1 %970, %v643_v57  }
 0x29e   : > { %971 = vset.pattern.permute.xlu1 %v1083_v58 }
 0x29f   : > { %669 = vperm.xlu1 %971, %v642_v55  }
 0x2a3   : > { %673 = vperm.xlu1 %971, %v643_v57  }
 0x30c   : > { %v647_v63 = vpop.permute.xlu0 %646 }
 0x30d   : > { %v654_v1 = vmul.f32 %v647_v63, %v1280_v28 }
 0x310   : > { %v652_v60 = vpop.permute.xlu1 %651 }
 0x311   : > { %v655_v6 = vmul.f32 %v652_v60, %v1283_v29 }
 0x315   : > { %v658_v61 = vpop.permute.xlu1 %657 }
 0x316   : > { %v664_v0 = vmul.f32 %v658_v61, %v1263_v22 }
 0x318   : > { %v666_v3 = vadd.f32 %v664_v0, %v654_v1 }
 0x319   : > { %v662_v62 = vpop.permute.xlu1 %661 }
 0x31a   : > { %v665_v4 = vmul.f32 %v662_v62, %v1266_v23 }
 0x31c   : > { %v667_v9 = vadd.f32 %v665_v4, %v655_v6 }
 0x31e   : > { %v670_v2 = vpop.permute.xlu1 %669 }
 0x31f   : > { %v676_v5 = vmul.f32 %v670_v2, %v1289_v31 }
 0x321   : > { %v678_v7 = vadd.f32 %v676_v5, %v666_v3 }
 0x322   : > { %v674_v8 = vpop.permute.xlu1 %673 }
 0x323   : > { %680 = vst [vmem:[%s1200_s27] sm:$0xff] %v678_v7  ;;  %v677_v10 = vmul.f32 %v674_v8, %v1292_v32 }
 0x325   : > { %v679_v11 = vadd.f32 %v677_v10, %v667_v9 }
 0x327   : > { %681 = vst [vmem:[%s1200_s27 + $0x8] sm:$0xff] %v679_v11 }
 0x328 PF: > { %s690_s13 = smul.u32 %s1061_s21, %s1065_s22  ;;  %s697_s12 = sshll.u32 %s1200_s27, 4  ;;  %s1324_s12 = int_to_ptr.vmem [resolvable:$true] %s697_s12 }
 0x329   : > { %s1394_s30 = sand.u32 1, %s1053_s19   ;;  %s983_s8 = scalar_lea.vmem %s1324_s12, 256 }
 0x32a   : > { %s812_s14 = sshll.u32 %s690_s13, 8  ;;  %s1333_s26 = scalar_lea.sflag [#allocation5], %s1394_s30 }
 0x32b   : > { %s1329_s17 = scalar_lea.hbm %s1390_s5, %s812_s14  ;;  %p984_p4 = scmp.ne.s32.totalorder %s1324_s12, %s983_s8 }
 0x32c   : > { %s1085_s21 = smov [#allocation4]  }
 0x32d   : > { %p985_p5 = pnand %p984_p4, %p1171_p6  ;;  %s987_s22 = sshll.u32 %s1085_s21, 4  ;;  %s988_s22 = int_to_ptr.vmem [resolvable:$false] %s987_s22 }
 0x32e   : > { %s989_s27 = scalar_lea.vmem %s988_s22, 512  ;;  %p990_p9 = scmp.lt.s32.totalorder %s1324_s12, %s988_s22 }
 0x32f   : > { %p986_p7 = pneg %p985_p5  ;;  %p991_p10 = scmp.lt.s32.totalorder %s989_s27, %s983_s8 }
 0x331   : > { %p992_p11 = por %p991_p10, %p990_p9 }
 0x333   : > { %p993_p12 = pnand %p992_p11, %p986_p7 }
 0x335   : > { %996 = shalt.err (!%p993_p12)
}
 0x336   : > { %s997_s9 = scalar_lea.hbm %s1329_s17, 256  ;;  %s1001_s14 = scalar_lea.hbm %s1390_s5, 1024 }
 0x337   : > { %p998_p13 = scmp.ne.s32.totalorder %s1329_s17, %s997_s9  ;;  %p1002_p2 = scmp.lt.u32.totalorder %s1329_s17, %s1390_s5 }
 0x338   : > { %p1003_p3 = scmp.lt.u32.totalorder %s1001_s14, %s997_s9  ;;  %p1005_p5 = scmp.lt.u32.totalorder %s997_s9, %s1329_s17 }
 0x339   : > { %p999_p0 = pnand %p998_p13, %p1171_p6 }
 0x33a   : > { %p1004_p4 = por %p1003_p3, %p1002_p2 }
 0x33b   : > { %p1000_p1 = pneg %p999_p0 }
 0x33c   : > { %p1006_p7 = por %p1005_p5, %p1004_p4 }
 0x33e   : > { %p1007_p9 = pnand %p1006_p7, %p1000_p1 }
 0x340   : > { %1010 = shalt.err (!%p1007_p9)
}
 0x341   : > { %s1086_s30 = smov 128   ;;  %s1087_s8 = smov 8  }
 0x342   : > { %865 = dma.vmem_to_hbm [thread:$0]  (%p1171_p6), %s1324_s12, 256, %s1329_s17, %s1333_s26, %s1086_s30, %s1086_s30, %s1087_s8  }
 0x343 PF: > { %p871_p10 = scmp.ge.s32.totalorder %s1077_s25, 2  ;;  %s712_s21 = sand.u32 1, %s1049_s18  }
 0x344   : > { %s713_s22 = scalar_lea.sflag [#allocation5], %s712_s21 }
 0x345   : > { %p868_p11 = pnand %p871_p10, %p1178_p8 }
 0x347   : > { %1044 = dma.done.wait (!%p868_p11), %s713_s22, 256  }
 0x348   : > { %1046 = vsyncadd (!%p868_p11), %s713_s22, 4294967040  ;;  %s18_s25 = sadd.s32 1, %s1077_s25   ;;  %s1395_s18 = smov %s1053_s19 }
 0x349   : > { %p15_p12 = scmp.ge.s32.totalorder %s18_s25, 10   ;;  %s1396_s19 = smov %s1057_s20 }
 0x34a   : > { %s1397_s20 = smov %s1187_s11  ;;  %s1398_s21 = smov %s1069_s23 }
 0x34b   : > { %s1399_s22 = smov %s1073_s24  ;;  %s1400_s23 = smov %s1403_s28 }
 0x34c   : > { %s1401_s24 = smov %s1407_s29  ;;  %17 = sbr.rel (!%p15_p12) target bundleno = 5 (0x5), region = 87 }
 0x353   :  { %718 = vsyncpa [#allocation5], 1 }
 0x354   :  { %720 = vsyncpa [#allocation5 + $0x1], 1 }

</bundles_post_ra>
